<compile_context>
chip_gen: v6e
topology: v6e:2x2x1
jax: 0.10.0
libtpu: 0.0.40
codegen_flags: <defaults>
</compile_context>

<pallas_src>
import functools

import jax
import jax.numpy as jnp
from jax.experimental import pallas as pl
from jax.experimental.pallas import tpu as pltpu

_LANES = 128
_SUBLANES = 8
_MAX_TILE_ROWS = 1024   # 1024 rows x 128 lanes x 4 B = 512 KiB per f32 input block
_MIN_PART_ROWS = 512    # engage 2 partitions once each partition has >= 512 rows


def _round_up(x: int, m: int) -> int:
    return ((x + m - 1) // m) * m


def _cdiv(a: int, b: int) -> int:
    return (a + b - 1) // b


def _dura_kernel(h_ref, r_ref, t_ref, out_ref, acc_ref, *,
                 n_inner, tile_rows, rows, need_mask):
    """acc(8,128) += sum over vreg-rows of (h^2 + t^2) * (1 + r^2); epilogue stores acc."""
    p = pl.program_id(0)
    i = pl.program_id(1)

    @pl.when(i == 0)
    def _():
        acc_ref[...] = jnp.zeros_like(acc_ref)

    h = h_ref[...].astype(jnp.float32)
    r = r_ref[...].astype(jnp.float32)
    t = t_ref[...].astype(jnp.float32)

    # (h^2 + t^2) + (h^2*r^2 + t^2*r^2) == (h^2 + t^2) * (1 + r^2)
    val = (h * h + t * t) * (1.0 + r * r)

    if need_mask:
        # Mask the ragged tail (and any fully out-of-range duplicate block whose
        # index was clamped in the index_map).
        row_start = (p * n_inner + i) * tile_rows          # logical, unclamped
        row_ids = row_start + jax.lax.broadcasted_iota(jnp.int32, val.shape, 0)
        val = jnp.where(row_ids < rows, val, 0.0)

    # Single-vreg accumulator: cross-vreg adds only (pure VALU, no XLU).
    acc_ref[...] += val.reshape(tile_rows // _SUBLANES, _SUBLANES, _LANES).sum(axis=0)

    @pl.when(i == pl.num_programs(1) - 1)
    def _():
        out_ref[0] = acc_ref[...]


@jax.jit
def _dura_factor_sum(h: jax.Array, r: jax.Array, t: jax.Array) -> jax.Array:
    """Scalar sum over all elements of (h^2 + t^2) * (1 + r^2) for ONE factor."""
    n = int(h.size)
    assert int(r.size) == n and int(t.size) == n

    itemsize = max(jnp.dtype(x.dtype).itemsize for x in (h, r, t))
    pack = _SUBLANES * max(1, 4 // itemsize)   # 8 rows (f32) / 16 (bf16) / 32 (int8)

    # Lane-dense (rows, 128) view.  Only copies (a tiny pad) when n % 128 != 0 or
    # the tensor is smaller than one packed vreg-row group; typical embedding
    # dims hit the free-reshape path.  Zero padding contributes exactly 0.
    n_padded = max(_round_up(n, _LANES), pack * _LANES)
    rows = n_padded // _LANES

    def _prep(x):
        x = x.reshape(-1)
        if n_padded != n:
            x = jnp.pad(x, (0, n_padded - n))
        return x.reshape(rows, _LANES)

    h2d, r2d, t2d = _prep(h), _prep(r), _prep(t)

    # Partition / tile selection.  Blocks never exceed the array's row extent, so
    # only clipped boundary DMAs (handled by the in-kernel mask) can occur.
    num_parts = 2 if rows >= 2 * _MIN_PART_ROWS else 1
    rows_per_part = _cdiv(rows, num_parts)
    max_full = (rows // pack) * pack
    tile_rows = max(pack, min(_MAX_TILE_ROWS, _round_up(rows_per_part, pack), max_full))
    n_inner = _cdiv(rows_per_part, tile_rows)
    last_block = _cdiv(rows, tile_rows) - 1
    need_mask = num_parts * n_inner * tile_rows > rows

    # Clamp logically-out-of-range block indices onto the last real block; their
    # contribution is zeroed by the in-kernel mask (which uses the unclamped
    # logical row offset).
    in_spec = pl.BlockSpec(
        (tile_rows, _LANES),
        lambda p, i: (jnp.minimum(p * n_inner + i, last_block), 0))

    kernel = functools.partial(_dura_kernel, n_inner=n_inner, tile_rows=tile_rows,
                               rows=rows, need_mask=need_mask)

    partials = pl.pallas_call(
        kernel,
        out_shape=jax.ShapeDtypeStruct((num_parts, _SUBLANES, _LANES), jnp.float32),
        grid_spec=pltpu.PrefetchScalarGridSpec(
            num_scalar_prefetch=0,
            grid=(num_parts, n_inner),
            in_specs=[in_spec, in_spec, in_spec],
            out_specs=pl.BlockSpec((1, _SUBLANES, _LANES), lambda p, i: (p, 0, 0)),
            scratch_shapes=[pltpu.VMEM((_SUBLANES, _LANES), jnp.float32)],
        ),
        compiler_params=pltpu.CompilerParams(
            # inner (reduction) axis carries the accumulator -> "arbitrary";
            # leading partition axis is independent -> "parallel" (v7x megacore).
            dimension_semantics=("parallel", "arbitrary"),
            # 3 inputs x 2 buffers x <=512 KiB + 4 KiB acc  <<  32 MiB.
            vmem_limit_bytes=32 * 1024 * 1024,
        ),
    )(h2d, r2d, t2d)

    return jnp.sum(partials)


def dura(factors, weight: float) -> jax.Array:
    """DURA.forward: factors is a sequence of (h, r, t) triples, each (B, D)."""
    total = jnp.float32(0.0)
    batch = None
    for h, r, t in factors:
        batch = h.shape[0]   # PyTorch: uses h.shape[0] of the *last* factor
        total = total + _dura_factor_sum(h, r, t)
    return jnp.float32(weight) * total / jnp.float32(batch)


def _dura_ref(factors, weight: float) -> jax.Array:
    """Pure-JAX reference for verification."""
    norm = 0.0
    for h, r, t in factors:
        h = h.astype(jnp.float32)
        r = r.astype(jnp.float32)
        t = t.astype(jnp.float32)
        norm = norm + jnp.sum(t**2 + h**2)
        norm = norm + jnp.sum(h**2 * r**2 + t**2 * r**2)
    return weight * norm / h.shape[0]


if __name__ == "__main__":
    key = jax.random.PRNGKey(0)
    weight = 0.1

    # Factors with deliberately different shapes to exercise:
    #   (16, 64)  : exact single-vreg fit, no masking, no padding
    #   (33, 128) : ragged rows -> in-kernel tail masking
    #   (16, 40)  : fewer rows than one vreg group -> tiny zero pad
    #   (512, 256): two-partition ("parallel") path
    shapes = [(16, 64), (33, 128), (16, 40), (512, 256)]
    keys = jax.random.split(key, 3 * len(shapes))
    factors = []
    for fi, (B, D) in enumerate(shapes):
        factors.append((
            jax.random.normal(keys[3 * fi + 0], (B, D), jnp.float32),
            jax.random.normal(keys[3 * fi + 1], (B, D), jnp.float32),
            jax.random.normal(keys[3 * fi + 2], (B, D), jnp.float32),
        ))

    out = jax.block_until_ready(dura(factors, weight))
    ref = jax.block_until_ready(_dura_ref(factors, weight))

    assert jnp.allclose(out, ref, rtol=1e-4, atol=1e-4), (out, ref)
    print("KERNEL_OK")
</pallas_src>

<mosaic_0001>
module attributes {stable_mosaic.version = 11 : i64} {
  func.func @_dura_kernel(%arg0: i32, %arg1: i32, %arg2: memref<8x128xf32, #tpu.memory_space<vmem>>, %arg3: memref<8x128xf32, #tpu.memory_space<vmem>>, %arg4: memref<8x128xf32, #tpu.memory_space<vmem>>, %arg5: memref<1x8x128xf32, #tpu.memory_space<vmem>>, %arg6: memref<8x128xf32, #tpu.memory_space<vmem>>) attributes {dimension_semantics = [#tpu.dimension_semantics<parallel>, #tpu.dimension_semantics<arbitrary>], iteration_bounds = array<i64: 1, 1>, scalar_prefetch = 0 : i64, scratch_operands = 1 : i64, tpu.core_type = #tpu.core_type<tc>, window_params = [{transform_indices = @transform_0, window_bounds = array<i64: 8, 128>}, {transform_indices = @transform_1, window_bounds = array<i64: 8, 128>}, {transform_indices = @transform_2, window_bounds = array<i64: 8, 128>}, {transform_indices = @transform_3, window_bounds = array<i64: 1, 8, 128>}]} {
    %c0_i32 = arith.constant 0 : i32
    %0 = arith.cmpi eq, %arg1, %c0_i32 : i32
    %1 = arith.extui %0 : i1 to i32
    %c0_i32_0 = arith.constant 0 : i32
    %2 = arith.cmpi ne, %1, %c0_i32_0 : i32
    scf.if %2 {
      %cst_13 = arith.constant 0.000000e+00 : f32
      %21 = vector.broadcast %cst_13 : f32 to vector<8x128xf32>
      %c0_14 = arith.constant 0 : index
      %c0_15 = arith.constant 0 : index
      %22 = vector.load %arg6[%c0_14, %c0_15] : memref<8x128xf32, #tpu.memory_space<vmem>>, vector<8x128xf32>
      tpu.vector_store %arg6[%c0_14, %c0_15], %21 {strides = array<i32>} : memref<8x128xf32, #tpu.memory_space<vmem>>, vector<8x128xf32>,
    } else {
    }
    %c0 = arith.constant 0 : index
    %c0_1 = arith.constant 0 : index
    %3 = vector.load %arg2[%c0, %c0_1] : memref<8x128xf32, #tpu.memory_space<vmem>>, vector<8x128xf32>
    %c0_2 = arith.constant 0 : index
    %c0_3 = arith.constant 0 : index
    %4 = vector.load %arg3[%c0_2, %c0_3] : memref<8x128xf32, #tpu.memory_space<vmem>>, vector<8x128xf32>
    %c0_4 = arith.constant 0 : index
    %c0_5 = arith.constant 0 : index
    %5 = vector.load %arg4[%c0_4, %c0_5] : memref<8x128xf32, #tpu.memory_space<vmem>>, vector<8x128xf32>
    %6 = arith.mulf %3, %3 : vector<8x128xf32>
    %7 = arith.mulf %5, %5 : vector<8x128xf32>
    %8 = arith.addf %6, %7 : vector<8x128xf32>
    %9 = arith.mulf %4, %4 : vector<8x128xf32>
    %cst = arith.constant 1.000000e+00 : f32
    %10 = vector.broadcast %cst : f32 to vector<8x128xf32>
    %11 = arith.addf %10, %9 : vector<8x128xf32>
    %12 = arith.mulf %8, %11 : vector<8x128xf32>
    %c0_6 = arith.constant 0 : index
    %c0_7 = arith.constant 0 : index
    %13 = vector.load %arg6[%c0_6, %c0_7] : memref<8x128xf32, #tpu.memory_space<vmem>>, vector<8x128xf32>
    %14 = vector.shape_cast %12 : vector<8x128xf32> to vector<1x8x128xf32>
    %cst_8 = arith.constant dense<0.000000e+00> : vector<8x128xf32>
    %15 = vector.multi_reduction <add>, %14, %cst_8 [0] : vector<1x8x128xf32> to vector<8x128xf32>
    %16 = arith.addf %13, %15 : vector<8x128xf32>
    %c0_9 = arith.constant 0 : index
    %c0_10 = arith.constant 0 : index
    %17 = vector.load %arg6[%c0_9, %c0_10] : memref<8x128xf32, #tpu.memory_space<vmem>>, vector<8x128xf32>
    tpu.vector_store %arg6[%c0_9, %c0_10], %16 {strides = array<i32>} : memref<8x128xf32, #tpu.memory_space<vmem>>, vector<8x128xf32>,
    %c0_i32_11 = arith.constant 0 : i32
    %18 = arith.cmpi eq, %arg1, %c0_i32_11 : i32
    %19 = arith.extui %18 : i1 to i32
    %c0_i32_12 = arith.constant 0 : i32
    %20 = arith.cmpi ne, %19, %c0_i32_12 : i32
    scf.if %20 {
      %c0_13 = arith.constant 0 : index
      %c0_14 = arith.constant 0 : index
      %21 = vector.load %arg6[%c0_13, %c0_14] : memref<8x128xf32, #tpu.memory_space<vmem>>, vector<8x128xf32>
      %c0_15 = arith.constant 0 : index
      %c0_16 = arith.constant 0 : index
      %c0_17 = arith.constant 0 : index
      %22 = vector.load %arg5[%c0_15, %c0_16, %c0_17] : memref<1x8x128xf32, #tpu.memory_space<vmem>>, vector<1x8x128xf32>
      %23 = vector.shape_cast %22 : vector<1x8x128xf32> to vector<8x128xf32>
      %24 = vector.shape_cast %21 : vector<8x128xf32> to vector<1x8x128xf32>
      tpu.vector_store %arg5[%c0_15, %c0_16, %c0_17], %24 {strides = array<i32>} : memref<1x8x128xf32, #tpu.memory_space<vmem>>, vector<1x8x128xf32>,
    } else {
    }
    return
  }
  func.func @transform_0(%arg0: i32, %arg1: i32) -> (i32, i32) {
    %c1_i32 = arith.constant 1 : i32
    %0 = arith.muli %arg0, %c1_i32 : i32
    %1 = arith.addi %0, %arg1 : i32
    %c0_i32 = arith.constant 0 : i32
    %2 = arith.minsi %1, %c0_i32 : i32
    %c0_i32_0 = arith.constant 0 : i32
    %c0_i32_1 = arith.constant 0 : i32
    return %2, %c0_i32_0 : i32, i32
  }
  func.func @transform_1(%arg0: i32, %arg1: i32) -> (i32, i32) {
    %c1_i32 = arith.constant 1 : i32
    %0 = arith.muli %arg0, %c1_i32 : i32
    %1 = arith.addi %0, %arg1 : i32
    %c0_i32 = arith.constant 0 : i32
    %2 = arith.minsi %1, %c0_i32 : i32
    %c0_i32_0 = arith.constant 0 : i32
    %c0_i32_1 = arith.constant 0 : i32
    return %2, %c0_i32_0 : i32, i32
  }
  func.func @transform_2(%arg0: i32, %arg1: i32) -> (i32, i32) {
    %c1_i32 = arith.constant 1 : i32
    %0 = arith.muli %arg0, %c1_i32 : i32
    %1 = arith.addi %0, %arg1 : i32
    %c0_i32 = arith.constant 0 : i32
    %2 = arith.minsi %1, %c0_i32 : i32
    %c0_i32_0 = arith.constant 0 : i32
    %c0_i32_1 = arith.constant 0 : i32
    return %2, %c0_i32_0 : i32, i32
  }
  func.func @transform_3(%arg0: i32, %arg1: i32) -> (i32, i32, i32) {
    %c0_i32 = arith.constant 0 : i32
    %c0_i32_0 = arith.constant 0 : i32
    %c0_i32_1 = arith.constant 0 : i32
    return %arg0, %c0_i32, %c0_i32_0 : i32, i32, i32
  }
}

</mosaic_0001>

<bundles_post_ra>
// kernel: _dura_factor_sum.1
= control target key start
LH: loop header
LB: loop body
LE: loop exit
PB: predicated region body
PF: predicated region fallthrough
CT: control target
= control target key end

     0   :  { %s172_s0 = inlined_call_operand.vmem [shape: f32[8,128], index: 0, kind: input, shape index: {}]   ;;  %s173_s1 = inlined_call_operand.vmem [shape: f32[8,128], index: 1, kind: input, shape index: {}]   ;;  %s174_s2 = inlined_call_operand.vmem [shape: f32[8,128], index: 2, kind: input, shape index: {}]   ;;  %s175_s3 = inlined_call_operand.vmem [shape: f32[1,8,128], index: 3, kind: output, shape index: {}]  }
   0x1   :  { %v100_v0 = vld [vmem:[%s172_s0] sm:$0xff] }
   0x2   :  { %v101_v1 = vld [vmem:[%s173_s1] sm:$0xff]  ;;  %v103_v3 = vmul.f32 %v100_v0, %v100_v0 }
   0x3   :  { %v102_v2 = vld [vmem:[%s174_s2] sm:$0xff]  ;;  %v106_v5 = vmul.f32 %v101_v1, %v101_v1 }
   0x4   :  { %v104_v4 = vmul.f32 %v102_v2, %v102_v2 }
   0x5   :  { %v107_v7 = vadd.f32 1.0, %v106_v5 }
   0x6   :  { %v105_v6 = vadd.f32 %v104_v4, %v103_v3 }
   0x8   :  { %v108_v8 = vmul.f32 %v107_v7, %v105_v6 }
   0xa   :  { %117 = vst [vmem:[%s175_s3] sm:$0xff] %v108_v8 }

</bundles_post_ra>
